<compile_context>
chip_gen: v6e
topology: v6e:2x2x1
jax: 0.10.0
libtpu: 0.0.40
codegen_flags: <defaults>
</compile_context>

<pallas_src>
import functools

import numpy as np
import jax
import jax.numpy as jnp
from jax import lax
from jax.experimental import pallas as pl
from jax.experimental.pallas import tpu as pltpu

_LANE = 128
_ROW_ALIGN = 64            # strip granularity (multiple of 8/16/32 sublane packs)
_VMEM_CAP = None


def _round_up(a, b):
    return (a + b - 1) // b * b


def _vmem_capacity_bytes():
    """Physical VMEM per core (trace-time query, cached; v7x-safe fallback)."""
    global _VMEM_CAP
    if _VMEM_CAP is None:
        cap = 64 * 1024 * 1024
        try:
            cap = int(getattr(pltpu.get_tpu_info(), "vmem_capacity_bytes", cap))
        except Exception:
            pass
        _VMEM_CAP = cap
    return _VMEM_CAP


def _freq_bands(multires, log_sampling):
    max_freq = multires - 1
    if log_sampling:
        bands = 2.0 ** np.linspace(0.0, max_freq, num=multires)
    else:
        bands = np.linspace(2.0 ** 0.0, 2.0 ** max_freq, num=multires)
    return bands.astype(np.float32)


def _recurrence_flags(bands, multires, log_sampling):
    log_rec = bool(log_sampling and multires >= 2
                   and np.allclose(bands, 2.0 ** np.arange(multires)))
    lin_rec = bool((not log_sampling) and multires >= 2)
    delta = float(bands[1] - bands[0]) if multires >= 2 else 0.0
    return log_rec, lin_rec, delta


def _sin_cos_terms(x, freqs, log_rec, lin_rec, delta, reseed):
    """Yield (sin(f*x), cos(f*x)) in f32 per frequency using cheap recurrences.

    Exact sin/cos are re-seeded every `reseed` frequencies; between reseeds
    the double-angle (log ladder) / angle-addition (linear ladder) steps cost
    ~5 VALU ops instead of two ~20-op polynomials.  Roundoff grows ~2-3x per
    recurrence step: reseed=4 keeps f32 outputs within ~5e-6 of direct
    evaluation; 6-8 is OK at the ~1e-4 level (useful on VALU-bound v7x).
    """
    s = c = sd = cd = None
    if lin_rec:
        xd = x * jnp.float32(delta)
        sd, cd = jnp.sin(xd), jnp.cos(xd)
    for i, f in enumerate(freqs):
        if i % reseed == 0 or not (log_rec or lin_rec):
            xf = x * jnp.float32(f)
            s, c = jnp.sin(xf), jnp.cos(xf)
        elif log_rec:          # f = 2 * prev: sin(2a) = 2sc, cos(2a) = 1 - 2s^2
            s, c = 2.0 * s * c, 1.0 - 2.0 * s * s
        else:                  # f = prev + delta: angle addition
            s, c = s * cd + c * sd, c * cd - s * sd
        yield s, c


def _make_flat_kernel(freqs, log_rec, lin_rec, delta, reseed, n_strips, strip_rows):
    """Lane-dense kernel: x_ref (tile_m, 128) -> o_ref (num_fns, tile_m, 128)."""

    def kernel(x_ref, o_ref):
        def strip(t, carry):
            r0 = pl.multiple_of(t * strip_rows, strip_rows)
            rows = pl.ds(r0, strip_rows)
            x_in = x_ref[rows, :]
            o_ref[0, rows, :] = x_in.astype(o_ref.dtype)          # include_input
            x = x_in.astype(jnp.float32)
            for i, (s, c) in enumerate(
                    _sin_cos_terms(x, freqs, log_rec, lin_rec, delta, reseed)):
                o_ref[1 + 2 * i, rows, :] = s.astype(o_ref.dtype)
                o_ref[2 + 2 * i, rows, :] = c.astype(o_ref.dtype)
            return carry

        lax.fori_loop(0, n_strips, strip, 0, unroll=True)

    return kernel


def _make_wide_kernel(freqs, d, log_rec, lin_rec, delta, reseed, n_strips, strip_rows):
    """Direct-layout kernel (D % 128 == 0): writes torch columns in one pass."""

    def kernel(x_ref, o_ref):
        def strip(t, carry):
            r0 = pl.multiple_of(t * strip_rows, strip_rows)
            rows = pl.ds(r0, strip_rows)
            x_in = x_ref[rows, :]
            o_ref[rows, 0:d] = x_in.astype(o_ref.dtype)
            x = x_in.astype(jnp.float32)
            for i, (s, c) in enumerate(
                    _sin_cos_terms(x, freqs, log_rec, lin_rec, delta, reseed)):
                o_ref[rows, (1 + 2 * i) * d:(2 + 2 * i) * d] = s.astype(o_ref.dtype)
                o_ref[rows, (2 + 2 * i) * d:(3 + 2 * i) * d] = c.astype(o_ref.dtype)
            return carry

        lax.fori_loop(0, n_strips, strip, 0, unroll=True)

    return kernel


@functools.partial(jax.jit, static_argnums=(1, 2, 3, 4, 5))
def _embed_impl(x2d, multires, log_sampling, block_rows, reseed_every, torch_layout):
    n, d = x2d.shape
    bands = _freq_bands(multires, log_sampling)
    freqs = [float(f) for f in bands]
    log_rec, lin_rec, delta = _recurrence_flags(bands, multires, log_sampling)
    reseed = max(1, int(reseed_every))
    num_fns = 1 + 2 * multires
    d_out = d * num_fns
    itemsize = jnp.dtype(x2d.dtype).itemsize
    sub = max(8, 32 // itemsize)          # native sublane pack: 8 f32 / 16 bf16 / 32 i8
    cap = _vmem_capacity_bytes()
    budget = min(int(cap * 0.4), 48 << 20)   # for the double-buffered in+out blocks
    n_seeds = -(-multires // reseed) if (log_rec or lin_rec) else multires

    if d % _LANE == 0 and torch_layout and d > 0:
        # -------- "wide" path: final layout already lane aligned -> one HBM pass.
        strip_rows = min(_ROW_ALIGN, max(sub, (8192 // d) // sub * sub))
        bytes_per_row = (d + d_out) * itemsize * 2
        budget_rows = max(strip_rows,
                          (budget // bytes_per_row) // strip_rows * strip_rows)
        want = _round_up(_round_up(n, sub), strip_rows)
        tile_n = min(_round_up(int(block_rows), strip_rows), budget_rows, want)
        if want >= 2 * strip_rows:        # keep >= 2 grid steps (v7x megacore)
            tile_n = min(tile_n, _round_up(-(-want // 2), strip_rows))
        n_strips = tile_n // strip_rows
        grid = pl.cdiv(n, tile_n)

        kernel = _make_wide_kernel(freqs, d, log_rec, lin_rec, delta, reseed,
                                   n_strips, strip_rows)
        blocks_bytes = 2 * tile_n * (d + d_out) * itemsize
        vmem_limit = min(int(cap * 0.9), blocks_bytes + (16 << 20))
        cost = pl.CostEstimate(
            flops=10 * multires * n * d,
            transcendentals=2 * n_seeds * n * d,
            bytes_accessed=(n * d + n * d_out) * itemsize)

        return pl.pallas_call(
            kernel,
            out_shape=jax.ShapeDtypeStruct((n, d_out), x2d.dtype),
            grid_spec=pltpu.PrefetchScalarGridSpec(
                num_scalar_prefetch=0,
                grid=(grid,),
                in_specs=[pl.BlockSpec((tile_n, d), lambda i: (i, 0))],
                out_specs=pl.BlockSpec((tile_n, d_out), lambda i: (i, 0))),
            compiler_params=pltpu.CompilerParams(
                dimension_semantics=("parallel",),
                vmem_limit_bytes=vmem_limit),
            cost_estimate=cost,
        )(x2d)

    # -------- "flat" lane-dense path (any D).
    total = n * d
    min_rows = _round_up(pl.cdiv(total, _LANE), sub)
    bytes_per_row = _LANE * itemsize * (1 + num_fns) * 2
    budget_rows = max(sub, budget // bytes_per_row)
    tile_m = min(int(block_rows), budget_rows)
    tile_m = max(sub, _round_up(tile_m, sub))
    if tile_m > _ROW_ALIGN:
        tile_m = tile_m // _ROW_ALIGN * _ROW_ALIGN
    cap_rows = _round_up(min_rows, _ROW_ALIGN) if min_rows > _ROW_ALIGN else min_rows
    tile_m = min(tile_m, cap_rows)
    if min_rows >= 2 * _ROW_ALIGN:        # keep >= 2 grid steps (v7x megacore)
        tile_m = min(tile_m, _round_up(-(-min_rows // 2), _ROW_ALIGN))
    strip_rows = min(_ROW_ALIGN, tile_m)
    n_strips = tile_m // strip_rows
    grid = pl.cdiv(min_rows, tile_m)      # ragged last tile is masked by Pallas

    # Single fused pad+reshape into the lane-dense (rows, 128) view (under jit).
    flat = x2d.reshape(-1)
    pad = min_rows * _LANE - total
    if pad:
        flat = jnp.pad(flat, (0, pad))
    x2 = flat.reshape(min_rows, _LANE)

    kernel = _make_flat_kernel(freqs, log_rec, lin_rec, delta, reseed,
                               n_strips, strip_rows)
    blocks_bytes = 2 * (1 + num_fns) * tile_m * _LANE * itemsize
    vmem_limit = min(int(cap * 0.9), blocks_bytes + (16 << 20))
    cost = pl.CostEstimate(
        flops=10 * multires * min_rows * _LANE,
        transcendentals=2 * n_seeds * min_rows * _LANE,
        bytes_accessed=(1 + num_fns) * min_rows * _LANE * itemsize)

    out3 = pl.pallas_call(
        kernel,
        out_shape=jax.ShapeDtypeStruct((num_fns, min_rows, _LANE), x2d.dtype),
        grid_spec=pltpu.PrefetchScalarGridSpec(
            num_scalar_prefetch=0,
            grid=(grid,),
            in_specs=[pl.BlockSpec((tile_m, _LANE), lambda i: (i, 0))],
            out_specs=pl.BlockSpec((num_fns, tile_m, _LANE), lambda i: (0, i, 0))),
        compiler_params=pltpu.CompilerParams(
            dimension_semantics=("parallel",),
            vmem_limit_bytes=vmem_limit),
        cost_estimate=cost,
    )(x2)

    out = out3.reshape(num_fns, min_rows * _LANE)[:, :total].reshape(num_fns, n, d)
    if not torch_layout:
        return out                         # fn-major (1+2L, N, D): no interleave pass
    # One fused XLA copy back to the PyTorch column ordering (whole wrapper is
    # a single jit so slice + transpose + reshape collapse into one pass).
    return jnp.transpose(out, (1, 0, 2)).reshape(n, d_out)


def nerf_positional_embedding(x, multires, log_sampling=True, block_rows=1024,
                              reseed_every=4, torch_layout=True):
    """Forward of Nerf_positional_embedding.  x: (1, N, D) or (N, D).

    Returns (N, D*(1+2*multires)) in the PyTorch column order when
    torch_layout=True; with torch_layout=False returns the fn-major
    (1+2L, N, D) layout (no interleave pass -- fold the permutation into the
    consumer's first Linear weight).
    """
    if x.ndim == 3 and x.shape[0] == 1:
        x = x[0]
    assert x.ndim == 2, "Expected 2D input (got {}D input)".format(x.ndim)
    return _embed_impl(x, int(multires), bool(log_sampling), int(block_rows),
                       int(reseed_every), bool(torch_layout))


def _reference(x, multires, log_sampling=True):
    """Pure-JAX reference mirroring the PyTorch module."""
    if x.ndim == 3:
        x = x[0]
    max_freq = multires - 1
    if log_sampling:
        freq_bands = 2.0 ** jnp.linspace(0.0, max_freq, num=multires)
    else:
        freq_bands = jnp.linspace(2.0 ** 0.0, 2.0 ** max_freq, num=multires)
    outs = [x]
    for f in freq_bands:
        outs.append(jnp.sin(x * f))
        outs.append(jnp.cos(x * f))
    return jnp.concatenate(outs, axis=1)


if __name__ == "__main__":
    key = jax.random.PRNGKey(0)
    k1, k2, k3, k4 = jax.random.split(key, 4)

    # Case 1: module-style input (1, N, D), log-sampled (power-of-two) freqs.
    N, D, L = 64, 4, 4
    x = jax.random.normal(k1, (1, N, D), dtype=jnp.float32)
    out = jax.block_until_ready(nerf_positional_embedding(x, L, log_sampling=True))
    ref = _reference(x, L, log_sampling=True)
    assert out.shape == (N, D * (1 + 2 * L)), out.shape
    np.testing.assert_allclose(np.asarray(out), np.asarray(ref), rtol=1e-5, atol=1e-5)

    # fn-major layout escape hatch (skips the interleave pass entirely).
    out_fm = jax.block_until_ready(
        nerf_positional_embedding(x, L, log_sampling=True, torch_layout=False))
    ref_fm = jnp.transpose(ref.reshape(N, 1 + 2 * L, D), (1, 0, 2))
    np.testing.assert_allclose(np.asarray(out_fm), np.asarray(ref_fm),
                               rtol=1e-5, atol=1e-5)

    # Case 2: multi-step grid (small block_rows) + linear freqs (angle-addition path).
    N2, D2, L2 = 1024, 4, 3
    x2 = jax.random.normal(k2, (N2, D2), dtype=jnp.float32)
    out2 = jax.block_until_ready(
        nerf_positional_embedding(x2, L2, log_sampling=False, block_rows=8))
    ref2 = _reference(x2, L2, log_sampling=False)
    np.testing.assert_allclose(np.asarray(out2), np.asarray(ref2), rtol=1e-5, atol=1e-5)

    # Case 3: NeRF-like (N, 3) coords in [-1, 1], L=10: strip loop, 2-step grid
    # (both v7x TensorCores), ragged last tile, double-angle ladder.
    N3, D3, L3 = 6144, 3, 10
    x3 = jax.random.uniform(k3, (N3, D3), dtype=jnp.float32, minval=-1.0, maxval=1.0)
    out3 = jax.block_until_ready(nerf_positional_embedding(x3, L3, log_sampling=True))
    ref3 = _reference(x3, L3, log_sampling=True)
    np.testing.assert_allclose(np.asarray(out3), np.asarray(ref3), rtol=1e-5, atol=1e-5)

    # Longer reseed interval (v7x VALU tuning knob) -- documented looser agreement.
    out3b = jax.block_until_ready(
        nerf_positional_embedding(x3, L3, log_sampling=True, reseed_every=8))
    np.testing.assert_allclose(np.asarray(out3b), np.asarray(ref3), rtol=1e-3, atol=1e-3)

    # Case 4: wide feature dim (D % 128 == 0) -> direct single-pass torch layout.
    N4, D4, L4 = 200, 128, 3
    x4 = jax.random.normal(k4, (N4, D4), dtype=jnp.float32)
    out4 = jax.block_until_ready(nerf_positional_embedding(x4, L4, log_sampling=True))
    ref4 = _reference(x4, L4, log_sampling=True)
    np.testing.assert_allclose(np.asarray(out4), np.asarray(ref4), rtol=1e-5, atol=1e-5)

    print("KERNEL_OK")
</pallas_src>

<mosaic_0001>
module attributes {stable_mosaic.version = 11 : i64} {
  func.func @kernel(%arg0: i32, %arg1: memref<8x128xf32, #tpu.memory_space<vmem>>, %arg2: memref<9x8x128xf32, #tpu.memory_space<vmem>>) attributes {dimension_semantics = [#tpu.dimension_semantics<parallel>], iteration_bounds = array<i64: 1>, scalar_prefetch = 0 : i64, scratch_operands = 0 : i64, tpu.core_type = #tpu.core_type<tc>, window_params = [{transform_indices = @transform_0, window_bounds = array<i64: 8, 128>}, {transform_indices = @transform_1, window_bounds = array<i64: 9, 8, 128>}]} {
    %c0_i32 = arith.constant 0 : i32
    %c8_i32 = arith.constant 8 : i32
    %0 = arith.muli %c0_i32, %c8_i32 : i32
    %1 = tpu.assume_multiple %0, 8 : i32
    %2 = arith.index_cast %1 : i32 to index
    %c0 = arith.constant 0 : index
    %3 = vector.load %arg1[%2, %c0] : memref<8x128xf32, #tpu.memory_space<vmem>>, vector<8x128xf32>
    %c0_0 = arith.constant 0 : index
    %4 = arith.index_cast %1 : i32 to index
    %c0_1 = arith.constant 0 : index
    %5 = vector.load %arg2[%c0_0, %4, %c0_1] : memref<9x8x128xf32, #tpu.memory_space<vmem>>, vector<1x8x128xf32>
    %6 = vector.shape_cast %5 : vector<1x8x128xf32> to vector<8x128xf32>
    %7 = vector.shape_cast %3 : vector<8x128xf32> to vector<1x8x128xf32>
    tpu.vector_store %arg2[%c0_0, %4, %c0_1], %7 {strides = array<i32>} : memref<9x8x128xf32, #tpu.memory_space<vmem>>, vector<1x8x128xf32>,
    %cst = arith.constant 1.000000e+00 : f32
    %8 = vector.broadcast %cst : f32 to vector<8x128xf32>
    %9 = arith.mulf %3, %8 : vector<8x128xf32>
    %10 = math.sin %9 : vector<8x128xf32>
    %11 = math.cos %9 : vector<8x128xf32>
    %c1 = arith.constant 1 : index
    %12 = arith.index_cast %1 : i32 to index
    %c0_2 = arith.constant 0 : index
    %13 = vector.load %arg2[%c1, %12, %c0_2] : memref<9x8x128xf32, #tpu.memory_space<vmem>>, vector<1x8x128xf32>
    %14 = vector.shape_cast %13 : vector<1x8x128xf32> to vector<8x128xf32>
    %15 = vector.shape_cast %10 : vector<8x128xf32> to vector<1x8x128xf32>
    tpu.vector_store %arg2[%c1, %12, %c0_2], %15 {strides = array<i32>} : memref<9x8x128xf32, #tpu.memory_space<vmem>>, vector<1x8x128xf32>,
    %c2 = arith.constant 2 : index
    %16 = arith.index_cast %1 : i32 to index
    %c0_3 = arith.constant 0 : index
    %17 = vector.load %arg2[%c2, %16, %c0_3] : memref<9x8x128xf32, #tpu.memory_space<vmem>>, vector<1x8x128xf32>
    %18 = vector.shape_cast %17 : vector<1x8x128xf32> to vector<8x128xf32>
    %19 = vector.shape_cast %11 : vector<8x128xf32> to vector<1x8x128xf32>
    tpu.vector_store %arg2[%c2, %16, %c0_3], %19 {strides = array<i32>} : memref<9x8x128xf32, #tpu.memory_space<vmem>>, vector<1x8x128xf32>,
    %cst_4 = arith.constant 2.000000e+00 : f32
    %20 = vector.broadcast %cst_4 : f32 to vector<8x128xf32>
    %21 = arith.mulf %20, %10 : vector<8x128xf32>
    %22 = arith.mulf %21, %11 : vector<8x128xf32>
    %cst_5 = arith.constant 2.000000e+00 : f32
    %23 = vector.broadcast %cst_5 : f32 to vector<8x128xf32>
    %24 = arith.mulf %23, %10 : vector<8x128xf32>
    %25 = arith.mulf %24, %10 : vector<8x128xf32>
    %cst_6 = arith.constant 1.000000e+00 : f32
    %26 = vector.broadcast %cst_6 : f32 to vector<8x128xf32>
    %27 = arith.subf %26, %25 : vector<8x128xf32>
    %c3 = arith.constant 3 : index
    %28 = arith.index_cast %1 : i32 to index
    %c0_7 = arith.constant 0 : index
    %29 = vector.load %arg2[%c3, %28, %c0_7] : memref<9x8x128xf32, #tpu.memory_space<vmem>>, vector<1x8x128xf32>
    %30 = vector.shape_cast %29 : vector<1x8x128xf32> to vector<8x128xf32>
    %31 = vector.shape_cast %22 : vector<8x128xf32> to vector<1x8x128xf32>
    tpu.vector_store %arg2[%c3, %28, %c0_7], %31 {strides = array<i32>} : memref<9x8x128xf32, #tpu.memory_space<vmem>>, vector<1x8x128xf32>,
    %c4 = arith.constant 4 : index
    %32 = arith.index_cast %1 : i32 to index
    %c0_8 = arith.constant 0 : index
    %33 = vector.load %arg2[%c4, %32, %c0_8] : memref<9x8x128xf32, #tpu.memory_space<vmem>>, vector<1x8x128xf32>
    %34 = vector.shape_cast %33 : vector<1x8x128xf32> to vector<8x128xf32>
    %35 = vector.shape_cast %27 : vector<8x128xf32> to vector<1x8x128xf32>
    tpu.vector_store %arg2[%c4, %32, %c0_8], %35 {strides = array<i32>} : memref<9x8x128xf32, #tpu.memory_space<vmem>>, vector<1x8x128xf32>,
    %cst_9 = arith.constant 2.000000e+00 : f32
    %36 = vector.broadcast %cst_9 : f32 to vector<8x128xf32>
    %37 = arith.mulf %36, %22 : vector<8x128xf32>
    %38 = arith.mulf %37, %27 : vector<8x128xf32>
    %cst_10 = arith.constant 2.000000e+00 : f32
    %39 = vector.broadcast %cst_10 : f32 to vector<8x128xf32>
    %40 = arith.mulf %39, %22 : vector<8x128xf32>
    %41 = arith.mulf %40, %22 : vector<8x128xf32>
    %cst_11 = arith.constant 1.000000e+00 : f32
    %42 = vector.broadcast %cst_11 : f32 to vector<8x128xf32>
    %43 = arith.subf %42, %41 : vector<8x128xf32>
    %c5 = arith.constant 5 : index
    %44 = arith.index_cast %1 : i32 to index
    %c0_12 = arith.constant 0 : index
    %45 = vector.load %arg2[%c5, %44, %c0_12] : memref<9x8x128xf32, #tpu.memory_space<vmem>>, vector<1x8x128xf32>
    %46 = vector.shape_cast %45 : vector<1x8x128xf32> to vector<8x128xf32>
    %47 = vector.shape_cast %38 : vector<8x128xf32> to vector<1x8x128xf32>
    tpu.vector_store %arg2[%c5, %44, %c0_12], %47 {strides = array<i32>} : memref<9x8x128xf32, #tpu.memory_space<vmem>>, vector<1x8x128xf32>,
    %c6 = arith.constant 6 : index
    %48 = arith.index_cast %1 : i32 to index
    %c0_13 = arith.constant 0 : index
    %49 = vector.load %arg2[%c6, %48, %c0_13] : memref<9x8x128xf32, #tpu.memory_space<vmem>>, vector<1x8x128xf32>
    %50 = vector.shape_cast %49 : vector<1x8x128xf32> to vector<8x128xf32>
    %51 = vector.shape_cast %43 : vector<8x128xf32> to vector<1x8x128xf32>
    tpu.vector_store %arg2[%c6, %48, %c0_13], %51 {strides = array<i32>} : memref<9x8x128xf32, #tpu.memory_space<vmem>>, vector<1x8x128xf32>,
    %cst_14 = arith.constant 2.000000e+00 : f32
    %52 = vector.broadcast %cst_14 : f32 to vector<8x128xf32>
    %53 = arith.mulf %52, %38 : vector<8x128xf32>
    %54 = arith.mulf %53, %43 : vector<8x128xf32>
    %cst_15 = arith.constant 2.000000e+00 : f32
    %55 = vector.broadcast %cst_15 : f32 to vector<8x128xf32>
    %56 = arith.mulf %55, %38 : vector<8x128xf32>
    %57 = arith.mulf %56, %38 : vector<8x128xf32>
    %cst_16 = arith.constant 1.000000e+00 : f32
    %58 = vector.broadcast %cst_16 : f32 to vector<8x128xf32>
    %59 = arith.subf %58, %57 : vector<8x128xf32>
    %c7 = arith.constant 7 : index
    %60 = arith.index_cast %1 : i32 to index
    %c0_17 = arith.constant 0 : index
    %61 = vector.load %arg2[%c7, %60, %c0_17] : memref<9x8x128xf32, #tpu.memory_space<vmem>>, vector<1x8x128xf32>
    %62 = vector.shape_cast %61 : vector<1x8x128xf32> to vector<8x128xf32>
    %63 = vector.shape_cast %54 : vector<8x128xf32> to vector<1x8x128xf32>
    tpu.vector_store %arg2[%c7, %60, %c0_17], %63 {strides = array<i32>} : memref<9x8x128xf32, #tpu.memory_space<vmem>>, vector<1x8x128xf32>,
    %c8 = arith.constant 8 : index
    %64 = arith.index_cast %1 : i32 to index
    %c0_18 = arith.constant 0 : index
    %65 = vector.load %arg2[%c8, %64, %c0_18] : memref<9x8x128xf32, #tpu.memory_space<vmem>>, vector<1x8x128xf32>
    %66 = vector.shape_cast %65 : vector<1x8x128xf32> to vector<8x128xf32>
    %67 = vector.shape_cast %59 : vector<8x128xf32> to vector<1x8x128xf32>
    tpu.vector_store %arg2[%c8, %64, %c0_18], %67 {strides = array<i32>} : memref<9x8x128xf32, #tpu.memory_space<vmem>>, vector<1x8x128xf32>,
    %c1_i32 = arith.constant 1 : i32
    return
  }
  func.func @transform_0(%arg0: i32) -> (i32, i32) {
    %c0_i32 = arith.constant 0 : i32
    %c0_i32_0 = arith.constant 0 : i32
    return %arg0, %c0_i32 : i32, i32
  }
  func.func @transform_1(%arg0: i32) -> (i32, i32, i32) {
    %c0_i32 = arith.constant 0 : i32
    %c0_i32_0 = arith.constant 0 : i32
    %c0_i32_1 = arith.constant 0 : i32
    return %c0_i32, %arg0, %c0_i32_0 : i32, i32, i32
  }
}

</mosaic_0001>

<bundles_post_ra>
// kernel: _embed_impl.1
= control target key start
LH: loop header
LB: loop body
LE: loop exit
PB: predicated region body
PF: predicated region fallthrough
CT: control target
= control target key end

     0   :  { %v295_v12 = vmov 683565275   ;;  %v296_v14 = vmov 2475754826   ;;  %v297_v16 = vmov 2131351028   ;;  %s363_s0 = inlined_call_operand.vmem [shape: f32[8,128], index: 0, kind: input, shape index: {}]   ;;  %s364_s1 = inlined_call_operand.vmem [shape: f32[9,8,128], index: 1, kind: output, shape index: {}]  }
   0x1   :  { %v314_v0 = vld [vmem:[%s363_s0] sm:$0xff]  ;;  %v298_v18 = vmov 2102212464   ;;  %v299_v20 = vmov 920167782  }
   0x2   :  { %9 = vst [vmem:[%s364_s1] sm:$0xff] %v314_v0  ;;  %v13_v1 = vand.u32 2139095040, %v314_v0  ;;  %v10_v3 = vand.u32 2147483647, %v314_v0  ;;  %v300_v27 = vmov 1326507024   ;;  %vm12_vm7 = vcmp.lt.s32.totalorder %v314_v0, 0 }
   0x3   :  { %vm102_vm15 = vweird.f32 %v314_v0 }
   0x4   :  { %v14_v2 = vshrl.u32 %v13_v1, 23  ;;  %v17_v6 = vand.u32 8388607, %v10_v3  ;;  %vm11_vm8 = vcmp.le.f32.partialorder %v10_v3, 0.7853982 }
   0x6   :  { %v265_v4 = vadd.s32 4294967169, %v14_v2  ;;  %v18_v10 = vor.u32 8388608, %v17_v6 }
   0x8   :  { %v20_v5 = vadd.s32 1, %v265_v4  ;;  %v58_v29 = vshll.u32 %v18_v10, 8 }
   0xa   :  { %vm21_vm0 = vcmp.gt.s32.totalorder %v20_v5, 0 }
   0xb   :  { %v22_v7 = vsel %vm21_vm0, %v20_v5, 0 }
   0xc   :  { %v24_v8 = vand.u32 31, %v22_v7  ;;  %v23_v9 = vshrl.u32 %v22_v7, 5 }
   0xe   :  { %v25_v11 = vsub.s32 32, %v24_v8  ;;  %v27_v13 = vshll.u32 %v295_v12, %v24_v8  ;;  %v30_v15 = vshll.u32 %v296_v14, %v24_v8  ;;  %v33_v17 = vshll.u32 %v297_v16, %v24_v8 }
   0xf   :  { %v36_v19 = vshll.u32 %v298_v18, %v24_v8  ;;  %v39_v21 = vshll.u32 %v299_v20, %v24_v8  ;;  %vm42_vm1 = vcmp.lt.s32.totalorder %v23_v9, 1  ;;  %vm45_vm2 = vcmp.lt.s32.totalorder %v23_v9, 4 }
  0x10   :  { %v26_v22 = vshrl.u32 %v295_v12, %v25_v11  ;;  %v28_v23 = vshrl.u32 %v296_v14, %v25_v11  ;;  %v31_v24 = vshrl.u32 %v297_v16, %v25_v11  ;;  %v34_v25 = vshrl.u32 %v298_v18, %v25_v11 }
  0x11   :  { %v37_v26 = vshrl.u32 %v299_v20, %v25_v11  ;;  %v40_v28 = vshrl.u32 %v300_v27, %v25_v11  ;;  %vm43_vm3 = vcmp.lt.s32.totalorder %v23_v9, 2  ;;  %vm44_vm4 = vcmp.lt.s32.totalorder %v23_v9, 3 }
  0x12   :  { %v29_v30 = vor.u32 %v28_v23, %v27_v13  ;;  %v32_v31 = vor.u32 %v31_v24, %v30_v15  ;;  %v35_v32 = vor.u32 %v34_v25, %v33_v17 }
  0x13   :  { %v38_v33 = vor.u32 %v37_v26, %v36_v19  ;;  %v41_v34 = vor.u32 %v40_v28, %v39_v21 }
  0x14   :  { %v46_v35 = vsel %vm42_vm1, %v26_v22, %v29_v30  ;;  %v47_v36 = vsel %vm45_vm2, %v35_v32, 2102212464  ;;  %v50_v37 = vsel %vm42_vm1, %v29_v30, %v32_v31  ;;  %v54_v38 = vsel %vm42_vm1, %v32_v31, %v35_v32 }
  0x15   :  { %v48_v39 = vsel %vm44_vm4, %v32_v31, %v47_v36  ;;  %v51_v40 = vsel %vm45_vm2, %v38_v33, 920167782  ;;  %v55_v41 = vsel %vm45_vm2, %v41_v34, 1326507024 }
  0x16   :  { %v52_v42 = vsel %vm44_vm4, %v35_v32, %v51_v40  ;;  %v56_v43 = vsel %vm44_vm4, %v38_v33, %v55_v41  ;;  %v49_v44 = vsel %vm43_vm3, %v46_v35, %v48_v39 }
  0x17   :  { %v53_v45 = vsel %vm43_vm3, %v50_v37, %v52_v42  ;;  %v57_v46 = vsel %vm43_vm3, %v54_v38, %v56_v43  ;;  %v65_v51 = vmul.u32 %v58_v29, %v49_v44 }
  0x18   :  { %v324_v47 = vmul.u32.u64.low %v58_v29, %v57_v46  ;;  %v325_v48 = vmul.u32.u64.high %v58_v29, %v57_v46, %v324_v47  ;;  %v327_v49 = vmul.u32.u64.low %v58_v29, %v53_v45  ;;  %v328_v50 = vmul.u32.u64.high %v58_v29, %v53_v45, %v327_v49 }
  0x1a   :  { %vm67_vm5 = vc.u32 %v325_v48, %v327_v49  ;;  %v68_v52 = vadd.s32 1, %v328_v50  ;;  %v66_v63 = vadd.s32 %v327_v49, %v325_v48 }
  0x1c   :  { %v69_v53 = vsel %vm67_vm5, %v68_v52, %v328_v50 }
  0x1d   :  { %v70_v54 = vadd.s32 %v69_v53, %v65_v51 }
  0x1f   :  { %v71_v55 = vadd.s32 536870912, %v70_v54 }
  0x21   :  { %v72_v56 = vshrl.u32 %v71_v55, 30 }
  0x23   :  { %v73_v57 = vshll.u32 %v72_v56, 30  ;;  %v96_v14 = vsub.s32 4, %v72_v56 }
  0x25   :  { %v74_v58 = vsub.s32 %v70_v54, %v73_v57  ;;  %v97_v17 = vsel %vm12_vm7, %v96_v14, %v72_v56 }
  0x26   :  { %v99_v19 = vsel %vm11_vm8, 0, %v97_v17 }
  0x27   :  { %v76_v59 = vsub.s32 0, %v74_v58  ;;  %v103_v20 = vadd.s32 3, %v99_v19  ;;  %v207_v22 = vand.u32 3, %v99_v19 }
  0x29   :  { %v266_v60 = vmin.u32 %v76_v59, %v74_v58  ;;  %v104_v21 = vand.u32 3, %v103_v20  ;;  %vm212_vm10 = vcmp.eq.s32.totalorder %v207_v22, 2  ;;  %vm209_vm12 = vcmp.eq.s32.totalorder %v207_v22, 0 }
  0x2a   :  { %vm208_vm14 = vcmp.lt.s32.totalorder %v207_v22, 2 }
  0x2b   :  { %v78_v61 = vclz %v266_v60  ;;  %vm109_vm9 = vcmp.eq.s32.totalorder %v104_v21, 2  ;;  %vm106_vm11 = vcmp.eq.s32.totalorder %v104_v21, 0  ;;  %vm105_vm13 = vcmp.lt.s32.totalorder %v104_v21, 2 }
  0x2d   :  { %v267_v62 = vadd.s32 4294967294, %v78_v61 }
  0x2f   :  { %vm268_vm6 = vcmp.lt.s32.totalorder %v267_v62, 0 }
  0x30   :  { %v81_v1 = vsel %vm268_vm6, 0, %v267_v62 }
  0x31   :  { %v82_v2 = vsub.s32 32, %v81_v1  ;;  %v83_v4 = vshll.u32 %v74_v58, %v81_v1  ;;  %v86_v5 = vsub.s32 4294967266, %v81_v1 }
  0x33   :  { %v84_v6 = vshrl.u32 %v66_v63, %v82_v2  ;;  %v87_v7 = vadd.s32 127, %v86_v5 }
  0x35   :  { %v85_v8 = vor.u32 %v84_v6, %v83_v4  ;;  %v88_v9 = vshll.u32 %v87_v7, 23 }
  0x37   :  { %v89_v10 = vor.u32 4788187, %v88_v9  ;;  %v92_v11 = vcvt.s32.f32 %v85_v8 }
  0x39   :  { %v90_v12 = vand.u32 2147483647, %v89_v10 }
  0x3b   :  { %v93_v13 = vmul.f32 %v92_v11, %v90_v12 }
  0x3d   :  { %v94_v15 = vxor.u32 2147483648, %v93_v13 }
  0x3f   :  { %v95_v16 = vsel %vm12_vm7, %v94_v15, %v93_v13 }
  0x40   :  { %v98_v18 = vsel %vm11_vm8, %v314_v0, %v95_v16 }
  0x41   :  { %291 = vcosq.f32 %v98_v18 }
  0x42   :  { %293 = vsinq.f32 %v98_v18 }
  0x4e   :  { %v292_v23 = vpop.eup %291 }
  0x4f   :  { %v294_v24 = vpop.eup %293  ;;  %v110_v25 = vxor.u32 2147483648, %v292_v23 }
  0x50   :  { %v107_v3 = vxor.u32 2147483648, %v294_v24 }
  0x51   :  { %v111_v26 = vsel %vm109_vm9, %v110_v25, %v294_v24  ;;  %v214_v27 = vsel %vm212_vm10, %v110_v25, %v294_v24 }
  0x52   :  { %v108_v28 = vsel %vm106_vm11, %v292_v23, %v107_v3  ;;  %v211_v29 = vsel %vm209_vm12, %v292_v23, %v107_v3 }
  0x53   :  { %v112_v30 = vsel %vm105_vm13, %v108_v28, %v111_v26  ;;  %v215_v31 = vsel %vm208_vm14, %v211_v29, %v214_v27 }
  0x54   :  { %v113_v32 = vsel %vm102_vm15, nan, %v112_v30  ;;  %v216_v33 = vsel %vm102_vm15, nan, %v215_v31 }
  0x55   :  { %273 = vst [vmem:[%s364_s1 + $0x8] sm:$0xff] %v113_v32  ;;  %274 = vst [vmem:[%s364_s1 + $0x10] sm:$0xff] %v216_v33  ;;  %v223_v34 = vmul.f32 2.0, %v113_v32 }
  0x57   :  { %v224_v35 = vmul.f32 %v223_v34, %v216_v33  ;;  %v225_v36 = vmul.f32 %v223_v34, %v113_v32 }
  0x59   :  { %275 = vst [vmem:[%s364_s1 + $0x18] sm:$0xff] %v224_v35  ;;  %v226_v0 = vsub.f32 1.0, %v225_v36  ;;  %v233_v37 = vmul.f32 2.0, %v224_v35 }
  0x5b   :  { %276 = vst [vmem:[%s364_s1 + $0x20] sm:$0xff] %v226_v0  ;;  %v234_v38 = vmul.f32 %v233_v37, %v226_v0  ;;  %v235_v39 = vmul.f32 %v233_v37, %v224_v35 }
  0x5d   :  { %277 = vst [vmem:[%s364_s1 + $0x28] sm:$0xff] %v234_v38  ;;  %v236_v40 = vsub.f32 1.0, %v235_v39  ;;  %v243_v41 = vmul.f32 2.0, %v234_v38 }
  0x5f   :  { %278 = vst [vmem:[%s364_s1 + $0x30] sm:$0xff] %v236_v40  ;;  %v244_v42 = vmul.f32 %v243_v41, %v236_v40  ;;  %v245_v43 = vmul.f32 %v243_v41, %v234_v38 }
  0x61   :  { %279 = vst [vmem:[%s364_s1 + $0x38] sm:$0xff] %v244_v42  ;;  %v246_v44 = vsub.f32 1.0, %v245_v43 }
  0x63   :  { %280 = vst [vmem:[%s364_s1 + $0x40] sm:$0xff] %v246_v44 }

</bundles_post_ra>
